<compile_context>
chip_gen: v6e
topology: v6e:2x2x1
jax: 0.10.0
libtpu: 0.0.40
codegen_flags: <defaults>
</compile_context>

<pallas_src>
import functools
import math

import jax
import jax.numpy as jnp
from jax.experimental import pallas as pl
from jax.experimental.pallas import tpu as pltpu


# ---------------------------------------------------------------------------
# tiling helper
# ---------------------------------------------------------------------------

def _tile(dim, target, align):
    """Largest tile <= target that divides `dim` and is a multiple of `align`;
    falls back to the full dim (always a legal block)."""
    if dim <= target:
        return dim
    t = (target // align) * align
    while t >= align:
        if dim % t == 0:
            return t
        t -= align
    return dim


# ---------------------------------------------------------------------------
# Kernel 1: tiled matmul + bias (+ optional GELU) epilogue
# ---------------------------------------------------------------------------

def _dense_kernel(x_ref, w_ref, b_ref, o_ref, acc_ref, *, activation):
    k = pl.program_id(2)

    @pl.when(k == 0)
    def _():
        acc_ref[...] = jnp.zeros_like(acc_ref)

    acc_ref[...] += jnp.dot(x_ref[...], w_ref[...],
                            preferred_element_type=jnp.float32)

    @pl.when(k == pl.num_programs(2) - 1)
    def _():
        y = acc_ref[...] + b_ref[...]
        if activation == "gelu":
            # tanh-approx GELU (HF BERT uses erf-GELU; deviation < 1e-3)
            c = jnp.float32(0.7978845608028654)  # sqrt(2/pi)
            y = 0.5 * y * (1.0 + jnp.tanh(c * (y + 0.044715 * y * y * y)))
        o_ref[...] = y.astype(o_ref.dtype)


def dense(x, w, b, activation=None):
    m, kdim = x.shape
    n = w.shape[1]
    tm = _tile(m, 256, 8)
    tn = _tile(n, 512, 128)
    tk = _tile(kdim, 512, 128)
    kern = functools.partial(_dense_kernel, activation=activation)
    return pl.pallas_call(
        kern,
        out_shape=jax.ShapeDtypeStruct((m, n), jnp.bfloat16),
        grid_spec=pltpu.PrefetchScalarGridSpec(
            num_scalar_prefetch=0,
            grid=(m // tm, n // tn, kdim // tk),
            in_specs=[pl.BlockSpec((tm, tk), lambda i, j, k: (i, k)),
                      pl.BlockSpec((tk, tn), lambda i, j, k: (k, j)),
                      pl.BlockSpec((1, tn), lambda i, j, k: (0, j))],
            out_specs=pl.BlockSpec((tm, tn), lambda i, j, k: (i, j)),
            scratch_shapes=[pltpu.VMEM((tm, tn), jnp.float32)]),
        compiler_params=pltpu.CompilerParams(
            dimension_semantics=("parallel", "parallel", "arbitrary")),
    )(x, w, b)


# ---------------------------------------------------------------------------
# Kernel 2: tiled matmul with fused (bias + residual-add + LayerNorm) epilogue
#           (output dim N kept un-tiled: the LN needs the full hidden row)
# ---------------------------------------------------------------------------

def _dense_add_ln_kernel(x_ref, w_ref, b_ref, r_ref, g_ref, beta_ref,
                         o_ref, acc_ref):
    k = pl.program_id(1)

    @pl.when(k == 0)
    def _():
        acc_ref[...] = jnp.zeros_like(acc_ref)

    acc_ref[...] += jnp.dot(x_ref[...], w_ref[...],
                            preferred_element_type=jnp.float32)

    @pl.when(k == pl.num_programs(1) - 1)
    def _():
        h = acc_ref[...] + b_ref[...] + r_ref[...].astype(jnp.float32)
        mu = jnp.mean(h, axis=-1, keepdims=True)
        var = jnp.mean((h - mu) * (h - mu), axis=-1, keepdims=True)
        y = (h - mu) * jax.lax.rsqrt(var + 1e-12) * g_ref[...] + beta_ref[...]
        o_ref[...] = y.astype(o_ref.dtype)


def dense_add_layernorm(x, w, b, residual, gamma, beta):
    m, kdim = x.shape
    n = w.shape[1]
    tm = _tile(m, 256, 8)
    tk = _tile(kdim, 512, 128)
    return pl.pallas_call(
        _dense_add_ln_kernel,
        out_shape=jax.ShapeDtypeStruct((m, n), jnp.bfloat16),
        grid_spec=pltpu.PrefetchScalarGridSpec(
            num_scalar_prefetch=0,
            grid=(m // tm, kdim // tk),
            in_specs=[pl.BlockSpec((tm, tk), lambda i, k: (i, k)),
                      pl.BlockSpec((tk, n), lambda i, k: (k, 0)),
                      pl.BlockSpec((1, n), lambda i, k: (0, 0)),
                      pl.BlockSpec((tm, n), lambda i, k: (i, 0)),
                      pl.BlockSpec((1, n), lambda i, k: (0, 0)),
                      pl.BlockSpec((1, n), lambda i, k: (0, 0))],
            out_specs=pl.BlockSpec((tm, n), lambda i, k: (i, 0)),
            scratch_shapes=[pltpu.VMEM((tm, n), jnp.float32)]),
        compiler_params=pltpu.CompilerParams(
            dimension_semantics=("parallel", "arbitrary")),
    )(x, w, b, residual, gamma, beta)


# ---------------------------------------------------------------------------
# Kernel 3: plain LayerNorm (embedding LN — no zero-residual round trip)
# ---------------------------------------------------------------------------

def _ln_kernel(x_ref, g_ref, b_ref, o_ref):
    x = x_ref[...].astype(jnp.float32)
    mu = jnp.mean(x, axis=-1, keepdims=True)
    var = jnp.mean((x - mu) * (x - mu), axis=-1, keepdims=True)
    o_ref[...] = ((x - mu) * jax.lax.rsqrt(var + 1e-12) * g_ref[...]
                  + b_ref[...]).astype(o_ref.dtype)


def layernorm(x, gamma, beta):
    m, h = x.shape
    tm = _tile(m, 512, 8)
    return pl.pallas_call(
        _ln_kernel,
        out_shape=jax.ShapeDtypeStruct((m, h), jnp.bfloat16),
        grid_spec=pltpu.PrefetchScalarGridSpec(
            num_scalar_prefetch=0,
            grid=(m // tm,),
            in_specs=[pl.BlockSpec((tm, h), lambda i: (i, 0)),
                      pl.BlockSpec((1, h), lambda i: (0, 0)),
                      pl.BlockSpec((1, h), lambda i: (0, 0))],
            out_specs=pl.BlockSpec((tm, h), lambda i: (i, 0))),
        compiler_params=pltpu.CompilerParams(
            dimension_semantics=("parallel",)),
    )(x, gamma, beta)


# ---------------------------------------------------------------------------
# Kernel 4: flash-style multi-head attention on the fused QKV activation
# ---------------------------------------------------------------------------

def _flash_attn_kernel(q_ref, kv_ref, bias_ref, o_ref,
                       m_scr, l_scr, acc_scr,
                       *, num_heads, head_dim, hidden, scale):
    ki = pl.program_id(2)

    @pl.when(ki == 0)
    def _():
        m_scr[...] = jnp.full(m_scr.shape, -1e30, dtype=jnp.float32)
        l_scr[...] = jnp.zeros_like(l_scr)
        acc_scr[...] = jnp.zeros_like(acc_scr)

    q = q_ref[0]          # (tq, 3H) bf16  — q rows
    kv = kv_ref[0]        # (tk, 3H) bf16  — kv rows
    bias = bias_ref[0]    # (1, tk)  f32   — additive mask bias for this kv tile

    for h in range(num_heads):            # static unroll; static lane slices
        q_h = q[:, h * head_dim:(h + 1) * head_dim]
        k_h = kv[:, hidden + h * head_dim:hidden + (h + 1) * head_dim]
        v_h = kv[:, 2 * hidden + h * head_dim:2 * hidden + (h + 1) * head_dim]

        s = jnp.einsum("qd,kd->qk", q_h, k_h,
                       preferred_element_type=jnp.float32) * scale + bias
        m_prev = m_scr[h]
        m_new = jnp.maximum(m_prev, jnp.max(s, axis=-1, keepdims=True))
        alpha = jnp.exp(m_prev - m_new)
        p = jnp.exp(s - m_new)
        l_scr[h] = alpha * l_scr[h] + jnp.sum(p, axis=-1, keepdims=True)
        acc_scr[h] = alpha * acc_scr[h] + jnp.dot(
            p.astype(v_h.dtype), v_h, preferred_element_type=jnp.float32)
        m_scr[h] = m_new

    @pl.when(ki == pl.num_programs(2) - 1)
    def _():
        heads = [acc_scr[h] * pl.reciprocal(l_scr[h], approx=True)
                 for h in range(num_heads)]
        # single lane-dense store of the merged heads
        o_ref[0] = jnp.concatenate(heads, axis=-1).astype(o_ref.dtype)


def flash_attention(qkv, mask_bias, num_heads, head_dim):
    b, s, three_h = qkv.shape
    hidden = num_heads * head_dim
    assert three_h == 3 * hidden
    tq = _tile(s, 256, 8)
    tk = _tile(s, 256, 128)
    kern = functools.partial(_flash_attn_kernel, num_heads=num_heads,
                             head_dim=head_dim, hidden=hidden,
                             scale=1.0 / math.sqrt(head_dim))
    return pl.pallas_call(
        kern,
        out_shape=jax.ShapeDtypeStruct((b, s, hidden), qkv.dtype),
        grid_spec=pltpu.PrefetchScalarGridSpec(
            num_scalar_prefetch=0,
            grid=(b, s // tq, s // tk),
            in_specs=[pl.BlockSpec((1, tq, three_h), lambda bi, qi, ki: (bi, qi, 0)),
                      pl.BlockSpec((1, tk, three_h), lambda bi, qi, ki: (bi, ki, 0)),
                      pl.BlockSpec((1, 1, tk), lambda bi, qi, ki: (bi, 0, ki))],
            out_specs=pl.BlockSpec((1, tq, hidden), lambda bi, qi, ki: (bi, qi, 0)),
            scratch_shapes=[pltpu.VMEM((num_heads, tq, 1), jnp.float32),
                            pltpu.VMEM((num_heads, tq, 1), jnp.float32),
                            pltpu.VMEM((num_heads, tq, head_dim), jnp.float32)]),
        compiler_params=pltpu.CompilerParams(
            dimension_semantics=("parallel", "parallel", "arbitrary")),
    )(qkv, qkv, mask_bias)


# ---------------------------------------------------------------------------
# Kernel 5: masked mean pooling -> sentence_embedding (f32)
# ---------------------------------------------------------------------------

def _mean_pool_kernel(x_ref, m_ref, o_ref):
    x = x_ref[0].astype(jnp.float32)                         # (S, H)
    m = m_ref[0]                                             # (S, 1)
    summed = jnp.sum(x * m, axis=0, keepdims=True)           # (1, H)
    denom = jnp.maximum(jnp.sum(m, axis=0, keepdims=True), 1e-9)
    o_ref[0] = summed / denom


def mean_pool(token_embeddings, attention_mask):
    b, s, h = token_embeddings.shape
    m = attention_mask.astype(jnp.float32).reshape(b, s, 1)
    out = pl.pallas_call(
        _mean_pool_kernel,
        out_shape=jax.ShapeDtypeStruct((b, 1, h), jnp.float32),
        grid_spec=pltpu.PrefetchScalarGridSpec(
            num_scalar_prefetch=0,
            grid=(b,),
            in_specs=[pl.BlockSpec((1, s, h), lambda bi: (bi, 0, 0)),
                      pl.BlockSpec((1, s, 1), lambda bi: (bi, 0, 0))],
            out_specs=pl.BlockSpec((1, 1, h), lambda bi: (bi, 0, 0))),
        compiler_params=pltpu.CompilerParams(
            dimension_semantics=("parallel",)),
    )(token_embeddings, m)
    return out.reshape(b, h)


# ---------------------------------------------------------------------------
# Parameter init (deterministic, synthetic "bert-base-uncased"-shaped small model)
# ---------------------------------------------------------------------------

def init_params(key, cfg):
    h, inter = cfg["hidden"], cfg["intermediate"]

    def nrm(k, shape, dtype=jnp.bfloat16):   # matmul weights live in bf16 (MXU feed)
        return (0.02 * jax.random.normal(k, shape)).astype(dtype)

    keys = jax.random.split(key, 3 + cfg["layers"])
    params = {
        "word_emb": nrm(keys[0], (cfg["vocab"], h), jnp.float32),
        "pos_emb": nrm(keys[1], (cfg["max_pos"], h), jnp.float32),
        "type_emb": nrm(keys[2], (2, h), jnp.float32),
        "emb_ln_g": jnp.ones((1, h), jnp.float32),
        "emb_ln_b": jnp.zeros((1, h), jnp.float32),
        "layers": [],
    }
    for li in range(cfg["layers"]):
        lk = jax.random.split(keys[3 + li], 4)
        params["layers"].append({
            "qkv_w": nrm(lk[0], (h, 3 * h)),                 # fused [Wq | Wk | Wv]
            "qkv_b": jnp.zeros((1, 3 * h), jnp.float32),
            "o_w": nrm(lk[1], (h, h)), "o_b": jnp.zeros((1, h), jnp.float32),
            "ln1_g": jnp.ones((1, h), jnp.float32), "ln1_b": jnp.zeros((1, h), jnp.float32),
            "i_w": nrm(lk[2], (h, inter)), "i_b": jnp.zeros((1, inter), jnp.float32),
            "out_w": nrm(lk[3], (inter, h)), "out_b": jnp.zeros((1, h), jnp.float32),
            "ln2_g": jnp.ones((1, h), jnp.float32), "ln2_b": jnp.zeros((1, h), jnp.float32),
        })
    return params


# ---------------------------------------------------------------------------
# Forward pass (glue = gathers/free reshapes; all matmul/softmax/LN/pool in Pallas)
# ---------------------------------------------------------------------------

def bert_for_sts(params, input_ids, attention_mask, cfg):
    b, s = input_ids.shape
    h = cfg["hidden"]
    nh = cfg["heads"]
    dh = h // nh

    # embeddings (gathers are plain-JAX glue) then LayerNorm in Pallas.
    # TODO(synk): token_type_ids assumed all-zero (single-segment), as in sentence-transformers.
    emb = (params["word_emb"][input_ids]
           + params["pos_emb"][jnp.arange(s)][None, :, :]
           + params["type_emb"][0][None, None, :])                       # (B, S, H) f32
    tokens = emb.reshape(b * s, h).astype(jnp.bfloat16)
    hidden = layernorm(tokens, params["emb_ln_g"], params["emb_ln_b"])   # (B*S, H) bf16

    # HF-BERT additive attention-mask bias, computed once and reused by every layer
    mask_bias = ((1.0 - attention_mask.astype(jnp.float32)) * -10000.0).reshape(b, 1, s)

    for layer in params["layers"]:
        # fused QKV projection (one pass over `hidden`, lane-dense 3H output)
        qkv = dense(hidden, layer["qkv_w"], layer["qkv_b"])              # (B*S, 3H) bf16
        # flash attention; heads split in-kernel -> no HBM head transpose
        ctx = flash_attention(qkv.reshape(b, s, 3 * h), mask_bias, nh, dh)
        # output projection with fused residual-add + LayerNorm epilogue
        hidden = dense_add_layernorm(ctx.reshape(b * s, h), layer["o_w"], layer["o_b"],
                                     hidden, layer["ln1_g"], layer["ln1_b"])
        # FFN: GELU fused into the intermediate matmul, add+LN fused into the output matmul
        ffn = dense(hidden, layer["i_w"], layer["i_b"], activation="gelu")
        hidden = dense_add_layernorm(ffn, layer["out_w"], layer["out_b"],
                                     hidden, layer["ln2_g"], layer["ln2_b"])

    # sentence-transformers masked mean pooling -> 'sentence_embedding'
    return mean_pool(hidden.reshape(b, s, h), attention_mask)


# ---------------------------------------------------------------------------

if __name__ == "__main__":
    cfg = dict(vocab=100, hidden=32, heads=4, layers=2, intermediate=128, max_pos=64)

    key = jax.random.PRNGKey(0)
    pkey, ikey = jax.random.split(key)
    params = init_params(pkey, cfg)

    B, S = 2, 8
    input_ids = jax.random.randint(ikey, (B, S), 0, cfg["vocab"], dtype=jnp.int32)
    attention_mask = jnp.array([[1, 1, 1, 1, 1, 1, 1, 1],
                                [1, 1, 1, 1, 1, 0, 0, 0]], dtype=jnp.int32)

    # TODO(synk): tokenizer / string preprocessing of SentenceTransformer has no Pallas
    # equivalent; inputs are already-tokenized {input_ids, attention_mask}.
    sentence_embedding = bert_for_sts(params, input_ids, attention_mask, cfg)
    jax.block_until_ready(sentence_embedding)

    assert sentence_embedding.shape == (B, cfg["hidden"])
    assert sentence_embedding.dtype == jnp.float32
    print("KERNEL_OK")
</pallas_src>

<mosaic_0001>
module attributes {stable_mosaic.version = 11 : i64} {
  func.func @_ln_kernel(%arg0: i32, %arg1: memref<16x32xbf16, #tpu.memory_space<vmem>>, %arg2: memref<1x32xf32, #tpu.memory_space<vmem>>, %arg3: memref<1x32xf32, #tpu.memory_space<vmem>>, %arg4: memref<16x32xbf16, #tpu.memory_space<vmem>>) attributes {dimension_semantics = [#tpu.dimension_semantics<parallel>], iteration_bounds = array<i64: 1>, scalar_prefetch = 0 : i64, scratch_operands = 0 : i64, tpu.core_type = #tpu.core_type<tc>, window_params = [{transform_indices = @transform_0, window_bounds = array<i64: 16, 32>}, {pipeline_mode = #tpu.pipeline_mode<synchronous>, transform_indices = @transform_1, window_bounds = array<i64: 1, 32>}, {pipeline_mode = #tpu.pipeline_mode<synchronous>, transform_indices = @transform_2, window_bounds = array<i64: 1, 32>}, {transform_indices = @transform_3, window_bounds = array<i64: 16, 32>}]} {
    %c0 = arith.constant 0 : index
    %c0_0 = arith.constant 0 : index
    %0 = vector.load %arg1[%c0, %c0_0] : memref<16x32xbf16, #tpu.memory_space<vmem>>, vector<16x32xbf16>
    %1 = arith.extf %0 : vector<16x32xbf16> to vector<16x32xf32>
    %cst = arith.constant dense<0.000000e+00> : vector<16xf32>
    %2 = vector.multi_reduction <add>, %1, %cst [1] : vector<16x32xf32> to vector<16xf32>
    %3 = vector.shape_cast %2 : vector<16xf32> to vector<16x1xf32>
    %cst_1 = arith.constant 3.200000e+01 : f32
    %4 = vector.broadcast %cst_1 : f32 to vector<16x1xf32>
    %5 = arith.divf %3, %4 : vector<16x1xf32>
    %6 = vector.broadcast %5 : vector<16x1xf32> to vector<16x32xf32>
    %7 = arith.subf %1, %6 : vector<16x32xf32>
    %8 = vector.broadcast %5 : vector<16x1xf32> to vector<16x32xf32>
    %9 = arith.subf %1, %8 : vector<16x32xf32>
    %10 = arith.mulf %7, %9 : vector<16x32xf32>
    %cst_2 = arith.constant dense<0.000000e+00> : vector<16xf32>
    %11 = vector.multi_reduction <add>, %10, %cst_2 [1] : vector<16x32xf32> to vector<16xf32>
    %12 = vector.shape_cast %11 : vector<16xf32> to vector<16x1xf32>
    %cst_3 = arith.constant 3.200000e+01 : f32
    %13 = vector.broadcast %cst_3 : f32 to vector<16x1xf32>
    %14 = arith.divf %12, %13 : vector<16x1xf32>
    %15 = vector.broadcast %5 : vector<16x1xf32> to vector<16x32xf32>
    %16 = arith.subf %1, %15 : vector<16x32xf32>
    %cst_4 = arith.constant 9.99999996E-13 : f32
    %17 = vector.broadcast %cst_4 : f32 to vector<16x1xf32>
    %18 = arith.addf %14, %17 : vector<16x1xf32>
    %19 = math.rsqrt %18 : vector<16x1xf32>
    %20 = vector.broadcast %19 : vector<16x1xf32> to vector<16x32xf32>
    %21 = arith.mulf %16, %20 : vector<16x32xf32>
    %c0_5 = arith.constant 0 : index
    %c0_6 = arith.constant 0 : index
    %22 = vector.load %arg2[%c0_5, %c0_6] : memref<1x32xf32, #tpu.memory_space<vmem>>, vector<1x32xf32>
    %23 = vector.broadcast %22 : vector<1x32xf32> to vector<16x32xf32>
    %24 = arith.mulf %21, %23 : vector<16x32xf32>
    %c0_7 = arith.constant 0 : index
    %c0_8 = arith.constant 0 : index
    %25 = vector.load %arg3[%c0_7, %c0_8] : memref<1x32xf32, #tpu.memory_space<vmem>>, vector<1x32xf32>
    %26 = vector.broadcast %25 : vector<1x32xf32> to vector<16x32xf32>
    %27 = arith.addf %24, %26 : vector<16x32xf32>
    %28 = arith.truncf %27 : vector<16x32xf32> to vector<16x32xbf16>
    %c0_9 = arith.constant 0 : index
    %c0_10 = arith.constant 0 : index
    %29 = vector.load %arg4[%c0_9, %c0_10] : memref<16x32xbf16, #tpu.memory_space<vmem>>, vector<16x32xbf16>
    tpu.vector_store %arg4[%c0_9, %c0_10], %28 {strides = array<i32>} : memref<16x32xbf16, #tpu.memory_space<vmem>>, vector<16x32xbf16>,
    return
  }
  func.func @transform_0(%arg0: i32) -> (i32, i32) {
    %c0_i32 = arith.constant 0 : i32
    %c0_i32_0 = arith.constant 0 : i32
    return %arg0, %c0_i32 : i32, i32
  }
  func.func @transform_1(%arg0: i32) -> (i32, i32) {
    %c0_i32 = arith.constant 0 : i32
    %c0_i32_0 = arith.constant 0 : i32
    %c0_i32_1 = arith.constant 0 : i32
    return %c0_i32, %c0_i32_0 : i32, i32
  }
  func.func @transform_2(%arg0: i32) -> (i32, i32) {
    %c0_i32 = arith.constant 0 : i32
    %c0_i32_0 = arith.constant 0 : i32
    %c0_i32_1 = arith.constant 0 : i32
    return %c0_i32, %c0_i32_0 : i32, i32
  }
  func.func @transform_3(%arg0: i32) -> (i32, i32) {
    %c0_i32 = arith.constant 0 : i32
    %c0_i32_0 = arith.constant 0 : i32
    return %arg0, %c0_i32 : i32, i32
  }
}

</mosaic_0001>

<bundles_post_ra>
// kernel: tpu_custom_call.1
= control target key start
LH: loop header
LB: loop body
LE: loop exit
PB: predicated region body
PF: predicated region fallthrough
CT: control target
= control target key end

     0   :  { %8 = vsyncpa [#allocation3], 0  ;;  %s215_s0 = inlined_call_operand.hbm [shape: bf16[16,32], index: 0, kind: input, shape index: {}]   ;;  %s216_s1 = inlined_call_operand.vmem [shape: f32[1,32], index: 1, kind: input, shape index: {}]   ;;  %s217_s2 = inlined_call_operand.vmem [shape: f32[1,32], index: 2, kind: input, shape index: {}]   ;;  %s218_s3 = inlined_call_operand.hbm [shape: bf16[16,32], index: 3, kind: output, shape index: {}]  }
   0x1   :  { %9 = vsyncpa [#allocation4], 0  ;;  %s169_s12 = smov [#allocation2]  }
   0x2   :  { %s15_s13 = sshll.u32 %s169_s12, 4  ;;  %s16_s13 = int_to_ptr.vmem [resolvable:$true] %s15_s13 }
   0x3   :  { %s133_s14 = scalar_lea.vmem %s16_s13, 128  ;;  %p138_p1 = scmp.lt.s32.totalorder %s16_s13, %s16_s13 }
   0x4   :  { %p134_p0 = scmp.ne.s32.totalorder %s16_s13, %s133_s14  ;;  %p139_p2 = scmp.lt.s32.totalorder %s133_s14, %s133_s14 }
   0x6   :  { %p140_p3 = por %p139_p2, %p138_p1 }
   0x8   :  { %p141_p4 = pnand %p140_p3, %p134_p0 }
   0xa   :  { %144 = shalt.err (!%p141_p4)
}
   0xb   :  { %s170_s15 = smov 64   ;;  %s171_s16 = smov 4  }
   0xc   :  { %21 = dma.hbm_to_vmem [thread:$0]  %s215_s0, 128, %s16_s13, [#allocation3], %s170_s15, %s170_s15, %s171_s16  }
   0xd   :  { %165 = dma.done.wait [#allocation3], 128  }
   0xe   :  { %166 = vsyncadd [#allocation3], 4294967168  ;;  %v114_v0 = vld [vmem:[#allocation2] sm:$0xff]   ;;  %vm33_vm0 = vcmask 261120   ;;  %vm87_vm1 = vcmask 257024   ;;  %s172_s22 = smov [#allocation5]  }
   0xf   :  { %v115_v1 = vunpack.c.l.bf16 %v114_v0  ;;  %v116_v2 = vunpack.c.h.bf16 %v114_v0  ;;  %v107_v22 = vld [vmem:[%s216_s1] ss:$0 sm:$0xff]  ;;  %s95_s23 = sshll.u32 %s172_s22, 4  ;;  %s96_s23 = int_to_ptr.vmem [resolvable:$true] %s95_s23 }
  0x10   :  { %v108_v24 = vld [vmem:[%s217_s2] ss:$0 sm:$0xff]  ;;  %s145_s1 = scalar_lea.vmem %s96_s23, 128  ;;  %p150_p6 = scmp.lt.s32.totalorder %s96_s23, %s96_s23 }
  0x11   :  { %v34_v3 = vsel %vm33_vm0, %v115_v1, 0.0  ;;  %v37_v4 = vsel %vm33_vm0, %v116_v2, 0.0  ;;  %p146_p5 = scmp.ne.s32.totalorder %s96_s23, %s145_s1  ;;  %p151_p7 = scmp.lt.s32.totalorder %s145_s1, %s145_s1 }
  0x12   :  { %35 = vadd.xlane.f32.xlu0 %v34_v3 }
  0x13   :  { %p152_p8 = por %p151_p7, %p150_p6 }
  0x15   :  { %p153_p9 = pnand %p152_p8, %p146_p5 }
  0x16   :  { %38 = vadd.xlane.f32.xlu0 %v37_v4 }
  0x9b   :  { %v36_v5 = vpop.xlane.xlu0 %35 }
  0x9c   :  { %v41_v6 = vmul.f32 0.03125, %v36_v5 }
  0x9e   :  { %v43_v7 = vsub.f32 %v115_v1, %v41_v6 }
  0x9f   :  { %v39_v8 = vpop.xlane.xlu0 %38 }
  0xa0   :  { %v42_v9 = vmul.f32 0.03125, %v39_v8  ;;  %v45_v10 = vmul.f32 %v43_v7, %v43_v7 }
  0xa2   :  { %v44_v11 = vsub.f32 %v116_v2, %v42_v9  ;;  %v47_v12 = vsel %vm33_vm0, %v45_v10, 0.0 }
  0xa3   :  { %48 = vadd.xlane.f32.xlu1 %v47_v12 }
  0xa4   :  { %v46_v13 = vmul.f32 %v44_v11, %v44_v11 }
  0xa6   :  { %v50_v14 = vsel %vm33_vm0, %v46_v13, 0.0 }
  0xa7   :  { %51 = vadd.xlane.f32.xlu1 %v50_v14 }
 0x12c   :  { %v49_v15 = vpop.xlane.xlu1 %48 }
 0x12d   :  { %v53_v16 = vmul.f32 0.03125, %v49_v15 }
 0x12f   :  { %v55_v17 = vadd.f32 1e-12, %v53_v16 }
 0x130   :  { %v52_v18 = vpop.xlane.xlu1 %51 }
 0x131   :  { %121 = vrsqrt.f32 %v55_v17  ;;  %v54_v19 = vmul.f32 0.03125, %v52_v18 }
 0x133   :  { %v56_v20 = vadd.f32 1e-12, %v54_v19 }
 0x135   :  { %123 = vrsqrt.f32 %v56_v20 }
 0x13e   :  { %v122_v21 = vpop.eup %121 }
 0x13f   :  { %v59_v23 = vmul.f32 %v122_v21, %v43_v7 }
 0x141   :  { %v68_v25 = vmul.f32 %v107_v22, %v59_v23 }
 0x142   :  { %v124_v26 = vpop.eup %123 }
 0x143   :  { %v60_v27 = vmul.f32 %v124_v26, %v44_v11  ;;  %v77_v28 = vadd.f32 %v108_v24, %v68_v25 }
 0x145   :  { %v69_v29 = vmul.f32 %v107_v22, %v60_v27  ;;  %v111_v30 = vpack.c.bf16 %v77_v28, %v77_v28 }
 0x147   :  { %v78_v31 = vadd.f32 %v108_v24, %v69_v29  ;;  %88 = vst.msk [vmem:[#allocation5] sm:$0xf] %vm87_vm1, %v111_v30 }
 0x149   :  { %v112_v32 = vpack.c.bf16 %v78_v31, %v78_v31 }
 0x14b   :  { %89 = vst.msk [vmem:[#allocation5 + $0x4] sm:$0xf] %vm87_vm1, %v112_v32 }
 0x14c   :  { %156 = shalt.err (!%p153_p9)
}
 0x14d   :  { %101 = dma.vmem_to_hbm [thread:$0]  %s96_s23, 128, %s218_s3, [#allocation4], %s170_s15, %s170_s15, %s171_s16  }
 0x14e   :  { %167 = dma.done.wait [#allocation4], 128  }
 0x14f   :  { %168 = vsyncadd [#allocation4], 4294967168 }
 0x150   :  { %105 = vsyncpa [#allocation3], 1 }
 0x151   :  { %106 = vsyncpa [#allocation4], 1 }

</bundles_post_ra>
